<compile_context>
chip_gen: v7x
topology: tpu7x:2x2x1
jax: 0.10.0
libtpu: 0.0.40
codegen_flags: <defaults>
</compile_context>

<pallas_src>
import functools

import jax
import jax.numpy as jnp
from jax.experimental import pallas as pl

# ---------------------------------------------------------------------------
# Hyper-parameters (fixed by the PyTorch module's feature arithmetic:
#   temp_ft = 10*4*4 and last_frame_ft = 2*11*11  =>  H = W = 11, C_in = 2)
# ---------------------------------------------------------------------------
TEMPORAL_FRAMES = 4
NUM_HIDDEN = 32
C_IN, C_OUT = 2, 10
IMG = 11
K3 = 4                                  # spatial kernel of the Conv3d
CONV_H = IMG - K3 + 1                   # 8
POOL_H = CONV_H // 2                    # 4
POOL_SITES = POOL_H * POOL_H            # 16 pooled spatial positions
TEMP_FT = C_OUT * POOL_SITES            # 160
LAST_FT = C_IN * IMG * IMG              # 242
TOTAL_FT = TEMP_FT + LAST_FT            # 402
KPATCH = C_IN * TEMPORAL_FRAMES * K3 * K3   # 128

# lane-padded sizes used inside the kernel
PAD_C = 16        # conv output channels padded 10 -> 16
PAD_LAST = 256    # last-frame features padded 242 -> 256
PAD_H = 128       # hidden width padded 32 -> 128
PAD_OUT = 128     # merged head lanes (move logits in 0..3, critic in 4)


# ---------------------------------------------------------------------------
# The single fused Pallas kernel
# ---------------------------------------------------------------------------
def _fused_kernel(patches_ref, last_ref, wc_ref, bc_ref,
                  w1t_ref, w1l_ref, b1_ref, w2_ref, b2_ref,
                  wh_ref, bh_ref, out_ref):
    # ---- Conv3d(2->10, k=(T,4,4)) as an im2col matmul + bias + ReLU --------
    s = jnp.dot(patches_ref[...], wc_ref[...], preferred_element_type=jnp.float32)
    s = jnp.maximum(s + bc_ref[...], 0.0)                        # (64, PAD_C)

    # ---- MaxPool3d((1,2,2)): patch rows are pool-window-position-major, ----
    # so the pool is an elementwise max of 4 contiguous sublane slices.
    pooled = jnp.maximum(jnp.maximum(s[0:16, :], s[16:32, :]),
                         jnp.maximum(s[32:48, :], s[48:64, :]))  # (16, PAD_C)

    # ---- Linear(402->H): split into temp + last-frame contributions. -------
    # w1t rows were pre-permuted at pack time to (pooled_site, channel) order,
    # so the pooled tile is consumed with no runtime transpose/reshape.
    w1t = w1t_ref[...]                                           # (16*PAD_C, PAD_H)
    h = jnp.dot(last_ref[...], w1l_ref[...], preferred_element_type=jnp.float32)
    for p in range(POOL_SITES):                                  # unrolled tiny dots
        h = h + jnp.dot(pooled[p:p + 1, :],
                        w1t[p * PAD_C:(p + 1) * PAD_C, :],
                        preferred_element_type=jnp.float32)
    h = jnp.maximum(h + b1_ref[...], 0.0)                        # (1, PAD_H)

    # TODO(synk): nn.Dropout(p=0.3) is identity in eval mode; training-mode dropout not implemented.
    h = jnp.maximum(jnp.dot(h, w2_ref[...], preferred_element_type=jnp.float32)
                    + b2_ref[...], 0.0)                          # (1, PAD_H)

    # ---- merged heads: lanes 0..3 = move logits, lane 4 = critic value -----
    heads = jnp.dot(h, wh_ref[...], preferred_element_type=jnp.float32) + bh_ref[...]
    lane = jax.lax.broadcasted_iota(jnp.int32, heads.shape, 1)
    move_lane = lane < 4
    masked = jnp.where(move_lane, heads, jnp.full_like(heads, -1e30))
    m = jnp.max(masked, axis=1, keepdims=True)
    z = jnp.sum(jnp.where(move_lane, jnp.exp(masked - m), 0.0), axis=1, keepdims=True)
    out_row = jnp.where(move_lane, heads - (m + jnp.log(z)), heads)   # LogSoftmax(dim=0)
    out_ref[...] = jnp.broadcast_to(out_row, out_ref.shape)     # dense (8,128) store


# ---------------------------------------------------------------------------
# Forward pass (everything under one jit; Pallas does all the math)
# ---------------------------------------------------------------------------
def _build_patches(frames):
    # im2col for Conv3d(valid, kernel (T,4,4)); depth kernel spans the full T.
    # Rows ordered pool-window-position-major: row = pos*16 + ph*4 + pw.
    x = jnp.transpose(frames, (1, 0, 2, 3)).astype(jnp.float32)  # (C, T, H, W)
    rows = []
    for pos in range(4):                                         # position in 2x2 pool window
        di, dj = pos // 2, pos % 2
        for ph in range(POOL_H):
            for pw in range(POOL_H):
                i, j = 2 * ph + di, 2 * pw + dj
                rows.append(x[:, :, i:i + K3, j:j + K3].reshape(-1))
    return jnp.stack(rows)                                       # (64, KPATCH)


@functools.partial(jax.jit, static_argnames=('mode',))
def _forward(frames, packed, *, mode):
    patches = _build_patches(frames)
    last_row = jnp.zeros((1, PAD_LAST), jnp.float32)
    last_row = last_row.at[0, :LAST_FT].set(frames[-1].astype(jnp.float32).reshape(-1))
    out = pl.pallas_call(
        _fused_kernel,
        out_shape=jax.ShapeDtypeStruct((8, PAD_OUT), jnp.float32),
    )(patches, last_row, packed['wc'], packed['bc'],
      packed['w1t'], packed['w1l'], packed['b1'],
      packed['w2'], packed['b2'], packed['wh'], packed['bh'])
    if mode == 'critic':
        return out[0, 4:5]
    return out[0, 0:4]


def actor_critic_no_field(frames, packed, mode):
    if mode == 'write':
        raise ValueError('write mode is not available for this network.')
    if mode not in ('critic', 'move'):
        raise ValueError('mode {0} not recognized'.format(mode))
    return _forward(frames, packed, mode=mode)


# ---------------------------------------------------------------------------
# Parameters (deterministic, synthetic)
# ---------------------------------------------------------------------------
def init_params(key):
    ks = jax.random.split(key, 10)
    p = {}
    p['wc'] = 0.1 * jax.random.normal(ks[0], (C_OUT, C_IN, TEMPORAL_FRAMES, K3, K3), jnp.float32)
    p['bc'] = 0.1 * jax.random.normal(ks[1], (C_OUT,), jnp.float32)
    p['w1'] = 0.05 * jax.random.normal(ks[2], (TOTAL_FT, NUM_HIDDEN), jnp.float32)
    p['b1'] = 0.05 * jax.random.normal(ks[3], (NUM_HIDDEN,), jnp.float32)
    p['w2'] = 0.1 * jax.random.normal(ks[4], (NUM_HIDDEN, NUM_HIDDEN), jnp.float32)
    p['b2'] = 0.1 * jax.random.normal(ks[5], (NUM_HIDDEN,), jnp.float32)
    p['w_critic'] = 0.1 * jax.random.normal(ks[6], (NUM_HIDDEN, 1), jnp.float32)
    p['b_critic'] = 0.1 * jax.random.normal(ks[7], (1,), jnp.float32)
    p['w_move'] = 0.1 * jax.random.normal(ks[8], (NUM_HIDDEN, 4), jnp.float32)
    p['b_move'] = 0.1 * jax.random.normal(ks[9], (4,), jnp.float32)
    return p


def _pad2(a, shape):
    out = jnp.zeros(shape, jnp.float32)
    return out.at[:a.shape[0], :a.shape[1]].set(a)


def pack_params(p):
    # conv weight as an im2col matrix, (c_in, t, kh, kw) row order
    wc_mat = p['wc'].reshape(C_OUT, -1).T                        # (KPATCH, C_OUT)
    # temp part of w1: PyTorch flatten order is o*16 + (ph*4+pw); permute to
    # (pooled_site, channel) so the kernel needs no runtime transpose.
    w1_temp = p['w1'][:TEMP_FT].reshape(C_OUT, POOL_SITES, NUM_HIDDEN)
    w1_temp = jnp.transpose(w1_temp, (1, 0, 2))                  # (p, o, j)
    w1t = jnp.zeros((POOL_SITES, PAD_C, PAD_H), jnp.float32)
    w1t = w1t.at[:, :C_OUT, :NUM_HIDDEN].set(w1_temp)
    w1t = w1t.reshape(POOL_SITES * PAD_C, PAD_H)                 # (256, 128)
    # merged heads: move in lanes 0..3, critic in lane 4
    wh = jnp.zeros((PAD_H, PAD_OUT), jnp.float32)
    wh = wh.at[:NUM_HIDDEN, 0:4].set(p['w_move'])
    wh = wh.at[:NUM_HIDDEN, 4:5].set(p['w_critic'])
    bh = jnp.zeros((1, PAD_OUT), jnp.float32)
    bh = bh.at[0, 0:4].set(p['b_move'])
    bh = bh.at[0, 4].set(p['b_critic'][0])
    return {
        'wc': _pad2(wc_mat, (KPATCH, PAD_C)),
        'bc': _pad2(p['bc'][None, :], (1, PAD_C)),
        'w1t': w1t,
        'w1l': _pad2(p['w1'][TEMP_FT:], (PAD_LAST, PAD_H)),
        'b1': _pad2(p['b1'][None, :], (1, PAD_H)),
        'w2': _pad2(p['w2'], (PAD_H, PAD_H)),
        'b2': _pad2(p['b2'][None, :], (1, PAD_H)),
        'wh': wh,
        'bh': bh,
    }


# ---------------------------------------------------------------------------
# Pure-JAX reference (same math, no Pallas) for verification
# ---------------------------------------------------------------------------
def _ref_forward(frames, p, mode):
    hp = jax.lax.Precision.HIGHEST
    x = jnp.transpose(frames, (1, 0, 2, 3))[None]                # (1,2,T,11,11)
    y = jax.lax.conv_general_dilated(
        x, p['wc'], window_strides=(1, 1, 1), padding='VALID',
        dimension_numbers=('NCDHW', 'OIDHW', 'NCDHW'), precision=hp)
    y = jnp.maximum(y + p['bc'].reshape(1, -1, 1, 1, 1), 0.0)    # (1,10,1,8,8)
    y = jax.lax.reduce_window(y, -jnp.inf, jax.lax.max,
                              (1, 1, 1, 2, 2), (1, 1, 1, 2, 2), 'VALID')
    feat = jnp.concatenate([y.reshape(-1), frames[-1].reshape(-1)])
    h = jnp.maximum(jnp.dot(feat, p['w1'], precision=hp) + p['b1'], 0.0)
    h = jnp.maximum(jnp.dot(h, p['w2'], precision=hp) + p['b2'], 0.0)
    if mode == 'critic':
        return jnp.dot(h, p['w_critic'], precision=hp) + p['b_critic']
    logits = jnp.dot(h, p['w_move'], precision=hp) + p['b_move']
    return jax.nn.log_softmax(logits, axis=0)


if __name__ == "__main__":
    key = jax.random.PRNGKey(0)
    k_param, k_x = jax.random.split(key)
    params = init_params(k_param)
    packed = pack_params(params)
    frames = jax.random.normal(k_x, (TEMPORAL_FRAMES, C_IN, IMG, IMG), jnp.float32)

    critic_out = actor_critic_no_field(frames, packed, 'critic')
    move_out = actor_critic_no_field(frames, packed, 'move')
    jax.block_until_ready((critic_out, move_out))

    ref_c = _ref_forward(frames, params, 'critic')
    ref_m = _ref_forward(frames, params, 'move')

    assert critic_out.shape == (1,), critic_out.shape
    assert move_out.shape == (4,), move_out.shape
    assert bool(jnp.allclose(critic_out, ref_c, atol=5e-2, rtol=5e-2)), (critic_out, ref_c)
    assert bool(jnp.allclose(move_out, ref_m, atol=5e-2, rtol=5e-2)), (move_out, ref_m)
    print("KERNEL_OK")
</pallas_src>

<mosaic_0001>
module attributes {stable_mosaic.version = 11 : i64} {
  func.func @_fused_kernel(%arg0: memref<64x128xf32, #tpu.memory_space<vmem>>, %arg1: memref<1x256xf32, #tpu.memory_space<vmem>>, %arg2: memref<128x16xf32, #tpu.memory_space<vmem>>, %arg3: memref<1x16xf32, #tpu.memory_space<vmem>>, %arg4: memref<256x128xf32, #tpu.memory_space<vmem>>, %arg5: memref<256x128xf32, #tpu.memory_space<vmem>>, %arg6: memref<1x128xf32, #tpu.memory_space<vmem>>, %arg7: memref<128x128xf32, #tpu.memory_space<vmem>>, %arg8: memref<1x128xf32, #tpu.memory_space<vmem>>, %arg9: memref<128x128xf32, #tpu.memory_space<vmem>>, %arg10: memref<1x128xf32, #tpu.memory_space<vmem>>, %arg11: memref<8x128xf32, #tpu.memory_space<vmem>>) attributes {dimension_semantics = [], scalar_prefetch = 0 : i64, scratch_operands = 0 : i64, tpu.core_type = #tpu.core_type<tc>} {
    %c0 = arith.constant 0 : index
    %c0_0 = arith.constant 0 : index
    %0 = vector.load %arg0[%c0, %c0_0] : memref<64x128xf32, #tpu.memory_space<vmem>>, vector<64x128xf32>
    %c0_1 = arith.constant 0 : index
    %c0_2 = arith.constant 0 : index
    %1 = vector.load %arg2[%c0_1, %c0_2] : memref<128x16xf32, #tpu.memory_space<vmem>>, vector<128x16xf32>
    %cst = arith.constant dense<0.000000e+00> : vector<64x16xf32>
    %2 = tpu.matmul %0, %1, %cst {dimension_numbers = #tpu.dot_dimension_numbers<[1], [0], [0], [1], [0, 0, 1, 1], [], []>} : vector<64x128xf32>, vector<128x16xf32>, vector<64x16xf32> -> vector<64x16xf32>
    %c0_3 = arith.constant 0 : index
    %c0_4 = arith.constant 0 : index
    %3 = vector.load %arg3[%c0_3, %c0_4] : memref<1x16xf32, #tpu.memory_space<vmem>>, vector<1x16xf32>
    %4 = vector.broadcast %3 : vector<1x16xf32> to vector<64x16xf32>
    %5 = arith.addf %2, %4 : vector<64x16xf32>
    %cst_5 = arith.constant 0.000000e+00 : f32
    %6 = vector.broadcast %cst_5 : f32 to vector<64x16xf32>
    %7 = arith.maximumf %5, %6 : vector<64x16xf32>
    %8 = vector.extract_strided_slice %7 {offsets = [0, 0], sizes = [16, 16], strides = [1, 1]} : vector<64x16xf32> to vector<16x16xf32>
    %9 = vector.extract_strided_slice %7 {offsets = [16, 0], sizes = [16, 16], strides = [1, 1]} : vector<64x16xf32> to vector<16x16xf32>
    %10 = arith.maximumf %8, %9 : vector<16x16xf32>
    %11 = vector.extract_strided_slice %7 {offsets = [32, 0], sizes = [16, 16], strides = [1, 1]} : vector<64x16xf32> to vector<16x16xf32>
    %12 = vector.extract_strided_slice %7 {offsets = [48, 0], sizes = [16, 16], strides = [1, 1]} : vector<64x16xf32> to vector<16x16xf32>
    %13 = arith.maximumf %11, %12 : vector<16x16xf32>
    %14 = arith.maximumf %10, %13 : vector<16x16xf32>
    %c0_6 = arith.constant 0 : index
    %c0_7 = arith.constant 0 : index
    %15 = vector.load %arg4[%c0_6, %c0_7] : memref<256x128xf32, #tpu.memory_space<vmem>>, vector<256x128xf32>
    %c0_8 = arith.constant 0 : index
    %c0_9 = arith.constant 0 : index
    %16 = vector.load %arg1[%c0_8, %c0_9] : memref<1x256xf32, #tpu.memory_space<vmem>>, vector<1x256xf32>
    %c0_10 = arith.constant 0 : index
    %c0_11 = arith.constant 0 : index
    %17 = vector.load %arg5[%c0_10, %c0_11] : memref<256x128xf32, #tpu.memory_space<vmem>>, vector<256x128xf32>
    %cst_12 = arith.constant dense<0.000000e+00> : vector<1x128xf32>
    %18 = tpu.matmul %16, %17, %cst_12 {dimension_numbers = #tpu.dot_dimension_numbers<[1], [0], [0], [1], [0, 0, 1, 1], [], []>} : vector<1x256xf32>, vector<256x128xf32>, vector<1x128xf32> -> vector<1x128xf32>
    %19 = vector.extract_strided_slice %14 {offsets = [0, 0], sizes = [1, 16], strides = [1, 1]} : vector<16x16xf32> to vector<1x16xf32>
    %20 = vector.extract_strided_slice %15 {offsets = [0, 0], sizes = [16, 128], strides = [1, 1]} : vector<256x128xf32> to vector<16x128xf32>
    %cst_13 = arith.constant dense<0.000000e+00> : vector<1x128xf32>
    %21 = tpu.matmul %19, %20, %cst_13 {dimension_numbers = #tpu.dot_dimension_numbers<[1], [0], [0], [1], [0, 0, 1, 1], [], []>} : vector<1x16xf32>, vector<16x128xf32>, vector<1x128xf32> -> vector<1x128xf32>
    %22 = arith.addf %18, %21 : vector<1x128xf32>
    %23 = vector.extract_strided_slice %14 {offsets = [1, 0], sizes = [1, 16], strides = [1, 1]} : vector<16x16xf32> to vector<1x16xf32>
    %24 = vector.extract_strided_slice %15 {offsets = [16, 0], sizes = [16, 128], strides = [1, 1]} : vector<256x128xf32> to vector<16x128xf32>
    %cst_14 = arith.constant dense<0.000000e+00> : vector<1x128xf32>
    %25 = tpu.matmul %23, %24, %cst_14 {dimension_numbers = #tpu.dot_dimension_numbers<[1], [0], [0], [1], [0, 0, 1, 1], [], []>} : vector<1x16xf32>, vector<16x128xf32>, vector<1x128xf32> -> vector<1x128xf32>
    %26 = arith.addf %22, %25 : vector<1x128xf32>
    %27 = vector.extract_strided_slice %14 {offsets = [2, 0], sizes = [1, 16], strides = [1, 1]} : vector<16x16xf32> to vector<1x16xf32>
    %28 = vector.extract_strided_slice %15 {offsets = [32, 0], sizes = [16, 128], strides = [1, 1]} : vector<256x128xf32> to vector<16x128xf32>
    %cst_15 = arith.constant dense<0.000000e+00> : vector<1x128xf32>
    %29 = tpu.matmul %27, %28, %cst_15 {dimension_numbers = #tpu.dot_dimension_numbers<[1], [0], [0], [1], [0, 0, 1, 1], [], []>} : vector<1x16xf32>, vector<16x128xf32>, vector<1x128xf32> -> vector<1x128xf32>
    %30 = arith.addf %26, %29 : vector<1x128xf32>
    %31 = vector.extract_strided_slice %14 {offsets = [3, 0], sizes = [1, 16], strides = [1, 1]} : vector<16x16xf32> to vector<1x16xf32>
    %32 = vector.extract_strided_slice %15 {offsets = [48, 0], sizes = [16, 128], strides = [1, 1]} : vector<256x128xf32> to vector<16x128xf32>
    %cst_16 = arith.constant dense<0.000000e+00> : vector<1x128xf32>
    %33 = tpu.matmul %31, %32, %cst_16 {dimension_numbers = #tpu.dot_dimension_numbers<[1], [0], [0], [1], [0, 0, 1, 1], [], []>} : vector<1x16xf32>, vector<16x128xf32>, vector<1x128xf32> -> vector<1x128xf32>
    %34 = arith.addf %30, %33 : vector<1x128xf32>
    %35 = vector.extract_strided_slice %14 {offsets = [4, 0], sizes = [1, 16], strides = [1, 1]} : vector<16x16xf32> to vector<1x16xf32>
    %36 = vector.extract_strided_slice %15 {offsets = [64, 0], sizes = [16, 128], strides = [1, 1]} : vector<256x128xf32> to vector<16x128xf32>
    %cst_17 = arith.constant dense<0.000000e+00> : vector<1x128xf32>
    %37 = tpu.matmul %35, %36, %cst_17 {dimension_numbers = #tpu.dot_dimension_numbers<[1], [0], [0], [1], [0, 0, 1, 1], [], []>} : vector<1x16xf32>, vector<16x128xf32>, vector<1x128xf32> -> vector<1x128xf32>
    %38 = arith.addf %34, %37 : vector<1x128xf32>
    %39 = vector.extract_strided_slice %14 {offsets = [5, 0], sizes = [1, 16], strides = [1, 1]} : vector<16x16xf32> to vector<1x16xf32>
    %40 = vector.extract_strided_slice %15 {offsets = [80, 0], sizes = [16, 128], strides = [1, 1]} : vector<256x128xf32> to vector<16x128xf32>
    %cst_18 = arith.constant dense<0.000000e+00> : vector<1x128xf32>
    %41 = tpu.matmul %39, %40, %cst_18 {dimension_numbers = #tpu.dot_dimension_numbers<[1], [0], [0], [1], [0, 0, 1, 1], [], []>} : vector<1x16xf32>, vector<16x128xf32>, vector<1x128xf32> -> vector<1x128xf32>
    %42 = arith.addf %38, %41 : vector<1x128xf32>
    %43 = vector.extract_strided_slice %14 {offsets = [6, 0], sizes = [1, 16], strides = [1, 1]} : vector<16x16xf32> to vector<1x16xf32>
    %44 = vector.extract_strided_slice %15 {offsets = [96, 0], sizes = [16, 128], strides = [1, 1]} : vector<256x128xf32> to vector<16x128xf32>
    %cst_19 = arith.constant dense<0.000000e+00> : vector<1x128xf32>
    %45 = tpu.matmul %43, %44, %cst_19 {dimension_numbers = #tpu.dot_dimension_numbers<[1], [0], [0], [1], [0, 0, 1, 1], [], []>} : vector<1x16xf32>, vector<16x128xf32>, vector<1x128xf32> -> vector<1x128xf32>
    %46 = arith.addf %42, %45 : vector<1x128xf32>
    %47 = vector.extract_strided_slice %14 {offsets = [7, 0], sizes = [1, 16], strides = [1, 1]} : vector<16x16xf32> to vector<1x16xf32>
    %48 = vector.extract_strided_slice %15 {offsets = [112, 0], sizes = [16, 128], strides = [1, 1]} : vector<256x128xf32> to vector<16x128xf32>
    %cst_20 = arith.constant dense<0.000000e+00> : vector<1x128xf32>
    %49 = tpu.matmul %47, %48, %cst_20 {dimension_numbers = #tpu.dot_dimension_numbers<[1], [0], [0], [1], [0, 0, 1, 1], [], []>} : vector<1x16xf32>, vector<16x128xf32>, vector<1x128xf32> -> vector<1x128xf32>
    %50 = arith.addf %46, %49 : vector<1x128xf32>
    %51 = vector.extract_strided_slice %14 {offsets = [8, 0], sizes = [1, 16], strides = [1, 1]} : vector<16x16xf32> to vector<1x16xf32>
    %52 = vector.extract_strided_slice %15 {offsets = [128, 0], sizes = [16, 128], strides = [1, 1]} : vector<256x128xf32> to vector<16x128xf32>
    %cst_21 = arith.constant dense<0.000000e+00> : vector<1x128xf32>
    %53 = tpu.matmul %51, %52, %cst_21 {dimension_numbers = #tpu.dot_dimension_numbers<[1], [0], [0], [1], [0, 0, 1, 1], [], []>} : vector<1x16xf32>, vector<16x128xf32>, vector<1x128xf32> -> vector<1x128xf32>
    %54 = arith.addf %50, %53 : vector<1x128xf32>
    %55 = vector.extract_strided_slice %14 {offsets = [9, 0], sizes = [1, 16], strides = [1, 1]} : vector<16x16xf32> to vector<1x16xf32>
    %56 = vector.extract_strided_slice %15 {offsets = [144, 0], sizes = [16, 128], strides = [1, 1]} : vector<256x128xf32> to vector<16x128xf32>
    %cst_22 = arith.constant dense<0.000000e+00> : vector<1x128xf32>
    %57 = tpu.matmul %55, %56, %cst_22 {dimension_numbers = #tpu.dot_dimension_numbers<[1], [0], [0], [1], [0, 0, 1, 1], [], []>} : vector<1x16xf32>, vector<16x128xf32>, vector<1x128xf32> -> vector<1x128xf32>
    %58 = arith.addf %54, %57 : vector<1x128xf32>
    %59 = vector.extract_strided_slice %14 {offsets = [10, 0], sizes = [1, 16], strides = [1, 1]} : vector<16x16xf32> to vector<1x16xf32>
    %60 = vector.extract_strided_slice %15 {offsets = [160, 0], sizes = [16, 128], strides = [1, 1]} : vector<256x128xf32> to vector<16x128xf32>
    %cst_23 = arith.constant dense<0.000000e+00> : vector<1x128xf32>
    %61 = tpu.matmul %59, %60, %cst_23 {dimension_numbers = #tpu.dot_dimension_numbers<[1], [0], [0], [1], [0, 0, 1, 1], [], []>} : vector<1x16xf32>, vector<16x128xf32>, vector<1x128xf32> -> vector<1x128xf32>
    %62 = arith.addf %58, %61 : vector<1x128xf32>
    %63 = vector.extract_strided_slice %14 {offsets = [11, 0], sizes = [1, 16], strides = [1, 1]} : vector<16x16xf32> to vector<1x16xf32>
    %64 = vector.extract_strided_slice %15 {offsets = [176, 0], sizes = [16, 128], strides = [1, 1]} : vector<256x128xf32> to vector<16x128xf32>
    %cst_24 = arith.constant dense<0.000000e+00> : vector<1x128xf32>
    %65 = tpu.matmul %63, %64, %cst_24 {dimension_numbers = #tpu.dot_dimension_numbers<[1], [0], [0], [1], [0, 0, 1, 1], [], []>} : vector<1x16xf32>, vector<16x128xf32>, vector<1x128xf32> -> vector<1x128xf32>
    %66 = arith.addf %62, %65 : vector<1x128xf32>
    %67 = vector.extract_strided_slice %14 {offsets = [12, 0], sizes = [1, 16], strides = [1, 1]} : vector<16x16xf32> to vector<1x16xf32>
    %68 = vector.extract_strided_slice %15 {offsets = [192, 0], sizes = [16, 128], strides = [1, 1]} : vector<256x128xf32> to vector<16x128xf32>
    %cst_25 = arith.constant dense<0.000000e+00> : vector<1x128xf32>
    %69 = tpu.matmul %67, %68, %cst_25 {dimension_numbers = #tpu.dot_dimension_numbers<[1], [0], [0], [1], [0, 0, 1, 1], [], []>} : vector<1x16xf32>, vector<16x128xf32>, vector<1x128xf32> -> vector<1x128xf32>
    %70 = arith.addf %66, %69 : vector<1x128xf32>
    %71 = vector.extract_strided_slice %14 {offsets = [13, 0], sizes = [1, 16], strides = [1, 1]} : vector<16x16xf32> to vector<1x16xf32>
    %72 = vector.extract_strided_slice %15 {offsets = [208, 0], sizes = [16, 128], strides = [1, 1]} : vector<256x128xf32> to vector<16x128xf32>
    %cst_26 = arith.constant dense<0.000000e+00> : vector<1x128xf32>
    %73 = tpu.matmul %71, %72, %cst_26 {dimension_numbers = #tpu.dot_dimension_numbers<[1], [0], [0], [1], [0, 0, 1, 1], [], []>} : vector<1x16xf32>, vector<16x128xf32>, vector<1x128xf32> -> vector<1x128xf32>
    %74 = arith.addf %70, %73 : vector<1x128xf32>
    %75 = vector.extract_strided_slice %14 {offsets = [14, 0], sizes = [1, 16], strides = [1, 1]} : vector<16x16xf32> to vector<1x16xf32>
    %76 = vector.extract_strided_slice %15 {offsets = [224, 0], sizes = [16, 128], strides = [1, 1]} : vector<256x128xf32> to vector<16x128xf32>
    %cst_27 = arith.constant dense<0.000000e+00> : vector<1x128xf32>
    %77 = tpu.matmul %75, %76, %cst_27 {dimension_numbers = #tpu.dot_dimension_numbers<[1], [0], [0], [1], [0, 0, 1, 1], [], []>} : vector<1x16xf32>, vector<16x128xf32>, vector<1x128xf32> -> vector<1x128xf32>
    %78 = arith.addf %74, %77 : vector<1x128xf32>
    %79 = vector.extract_strided_slice %14 {offsets = [15, 0], sizes = [1, 16], strides = [1, 1]} : vector<16x16xf32> to vector<1x16xf32>
    %80 = vector.extract_strided_slice %15 {offsets = [240, 0], sizes = [16, 128], strides = [1, 1]} : vector<256x128xf32> to vector<16x128xf32>
    %cst_28 = arith.constant dense<0.000000e+00> : vector<1x128xf32>
    %81 = tpu.matmul %79, %80, %cst_28 {dimension_numbers = #tpu.dot_dimension_numbers<[1], [0], [0], [1], [0, 0, 1, 1], [], []>} : vector<1x16xf32>, vector<16x128xf32>, vector<1x128xf32> -> vector<1x128xf32>
    %82 = arith.addf %78, %81 : vector<1x128xf32>
    %c0_29 = arith.constant 0 : index
    %c0_30 = arith.constant 0 : index
    %83 = vector.load %arg6[%c0_29, %c0_30] : memref<1x128xf32, #tpu.memory_space<vmem>>, vector<1x128xf32>
    %84 = arith.addf %82, %83 : vector<1x128xf32>
    %cst_31 = arith.constant 0.000000e+00 : f32
    %85 = vector.broadcast %cst_31 : f32 to vector<1x128xf32>
    %86 = arith.maximumf %84, %85 : vector<1x128xf32>
    %c0_32 = arith.constant 0 : index
    %c0_33 = arith.constant 0 : index
    %87 = vector.load %arg7[%c0_32, %c0_33] : memref<128x128xf32, #tpu.memory_space<vmem>>, vector<128x128xf32>
    %cst_34 = arith.constant dense<0.000000e+00> : vector<1x128xf32>
    %88 = tpu.matmul %86, %87, %cst_34 {dimension_numbers = #tpu.dot_dimension_numbers<[1], [0], [0], [1], [0, 0, 1, 1], [], []>} : vector<1x128xf32>, vector<128x128xf32>, vector<1x128xf32> -> vector<1x128xf32>
    %c0_35 = arith.constant 0 : index
    %c0_36 = arith.constant 0 : index
    %89 = vector.load %arg8[%c0_35, %c0_36] : memref<1x128xf32, #tpu.memory_space<vmem>>, vector<1x128xf32>
    %90 = arith.addf %88, %89 : vector<1x128xf32>
    %cst_37 = arith.constant 0.000000e+00 : f32
    %91 = vector.broadcast %cst_37 : f32 to vector<1x128xf32>
    %92 = arith.maximumf %90, %91 : vector<1x128xf32>
    %c0_38 = arith.constant 0 : index
    %c0_39 = arith.constant 0 : index
    %93 = vector.load %arg9[%c0_38, %c0_39] : memref<128x128xf32, #tpu.memory_space<vmem>>, vector<128x128xf32>
    %cst_40 = arith.constant dense<0.000000e+00> : vector<1x128xf32>
    %94 = tpu.matmul %92, %93, %cst_40 {dimension_numbers = #tpu.dot_dimension_numbers<[1], [0], [0], [1], [0, 0, 1, 1], [], []>} : vector<1x128xf32>, vector<128x128xf32>, vector<1x128xf32> -> vector<1x128xf32>
    %c0_41 = arith.constant 0 : index
    %c0_42 = arith.constant 0 : index
    %95 = vector.load %arg10[%c0_41, %c0_42] : memref<1x128xf32, #tpu.memory_space<vmem>>, vector<1x128xf32>
    %96 = arith.addf %94, %95 : vector<1x128xf32>
    %97 = tpu.iota {dimensions = array<i32: 1>} : vector<1x128xi32>
    %c4_i32 = arith.constant 4 : i32
    %98 = vector.broadcast %c4_i32 : i32 to vector<1x128xi32>
    %99 = arith.cmpi slt, %97, %98 : vector<1x128xi32>
    %cst_43 = arith.constant -1.000000e+30 : f32
    %100 = vector.broadcast %cst_43 : f32 to vector<1x128xf32>
    %101 = arith.select %99, %96, %100 : vector<1x128xi1>, vector<1x128xf32>
    %cst_44 = arith.constant dense<0xFF800000> : vector<1xf32>
    %102 = vector.multi_reduction <maximumf>, %101, %cst_44 [1] : vector<1x128xf32> to vector<1xf32>
    %103 = vector.shape_cast %102 : vector<1xf32> to vector<1x1xf32>
    %104 = vector.broadcast %103 : vector<1x1xf32> to vector<1x128xf32>
    %105 = arith.subf %101, %104 : vector<1x128xf32>
    %106 = math.exp %105 : vector<1x128xf32>
    %cst_45 = arith.constant 0.000000e+00 : f32
    %107 = vector.broadcast %cst_45 : f32 to vector<1x128xf32>
    %108 = arith.select %99, %106, %107 : vector<1x128xi1>, vector<1x128xf32>
    %cst_46 = arith.constant dense<0.000000e+00> : vector<1xf32>
    %109 = vector.multi_reduction <add>, %108, %cst_46 [1] : vector<1x128xf32> to vector<1xf32>
    %110 = vector.shape_cast %109 : vector<1xf32> to vector<1x1xf32>
    %111 = math.log %110 : vector<1x1xf32>
    %112 = arith.addf %103, %111 : vector<1x1xf32>
    %113 = vector.broadcast %112 : vector<1x1xf32> to vector<1x128xf32>
    %114 = arith.subf %96, %113 : vector<1x128xf32>
    %115 = arith.select %99, %114, %96 : vector<1x128xi1>, vector<1x128xf32>
    %116 = vector.shape_cast %115 : vector<1x128xf32> to vector<1x128xf32>
    %117 = vector.broadcast %116 : vector<1x128xf32> to vector<8x128xf32>
    %c0_47 = arith.constant 0 : index
    %c0_48 = arith.constant 0 : index
    %118 = vector.load %arg11[%c0_47, %c0_48] : memref<8x128xf32, #tpu.memory_space<vmem>>, vector<8x128xf32>
    tpu.vector_store %arg11[%c0_47, %c0_48], %117 {strides = array<i32>} : memref<8x128xf32, #tpu.memory_space<vmem>>, vector<8x128xf32>,
    return
  }
}

</mosaic_0001>

<bundles_post_ra>
// kernel: _forward.1
= control target key start
LH: loop header
LB: loop body
LE: loop exit
PB: predicated region body
PF: predicated region fallthrough
CT: control target
= control target key end

     0   :  { %v2276_v35 = vmov 0.0|0.0   ;;  %vm2277_vm0 = vmmov 0   ;;  %v2278_v42 = vmov 0.0   ;;  %v328_v54 = vlaneseq  ;;  %s2838_s2 = inlined_call_operand.vmem [shape: f32[128,16], index: 2, kind: input, shape index: {}]   ;;  %s2839_s0 = inlined_call_operand.vmem [shape: f32[64,128], index: 0, kind: input, shape index: {}]   ;;  %s2840_s4 = inlined_call_operand.vmem [shape: f32[256,128], index: 4, kind: input, shape index: {}]   ;;  %s2841_s5 = inlined_call_operand.vmem [shape: f32[256,128], index: 5, kind: input, shape index: {}]   ;;  %s2842_s3 = inlined_call_operand.vmem [shape: f32[1,16], index: 3, kind: input, shape index: {}]   ;;  %s2843_s1 = inlined_call_operand.vmem [shape: f32[1,256], index: 1, kind: input, shape index: {}]   ;;  %s2844_s7 = inlined_call_operand.vmem [shape: f32[128,128], index: 7, kind: input, shape index: {}]   ;;  %s2845_s9 = inlined_call_operand.vmem [shape: f32[128,128], index: 9, kind: input, shape index: {}]   ;;  %s2846_s6 = inlined_call_operand.vmem [shape: f32[1,128], index: 6, kind: input, shape index: {}]   ;;  %s2847_s8 = inlined_call_operand.vmem [shape: f32[1,128], index: 8, kind: input, shape index: {}]   ;;  %s2848_s10 = inlined_call_operand.vmem [shape: f32[1,128], index: 10, kind: input, shape index: {}]   ;;  %s2849_s11 = inlined_call_operand.vmem [shape: f32[8,128], index: 11, kind: output, shape index: {}]  }
   0x1   :  { %v46_v0 = vld [vmem:[%s2838_s2] sm:$0xff]  ;;  %v47_v1 = vld [vmem:[%s2838_s2 + $0x8] sm:$0xff]  ;;  %v48_v2 = vld [vmem:[%s2838_s2 + $0x10] sm:$0xff]  ;;  %2141 = vmatprep.subr.bf16.mxu1 %v2276_v35  ;;  %1931 = vmatprep.mubr.msk.f32.mxu1 %vm2277_vm0, %v2278_v42  ;;  %vm253_vm1 = vcmask 130048   ;;  %vm1700_vm3 = vcmask 1040384  }
   0x2   :  { %v2109_v3 = vpack.c.bf16 %v47_v1, %v46_v0  ;;  %v49_v4 = vld [vmem:[%s2838_s2 + $0x18] sm:$0xff]  ;;  %v50_v6 = vld [vmem:[%s2838_s2 + $0x20] sm:$0xff]  ;;  %v51_v7 = vld [vmem:[%s2838_s2 + $0x28] sm:$0xff]  ;;  %v2440_v62 = vshrl.u32 %v328_v54, 7 }
   0x3   :  { %v2113_v5 = vpack.c.bf16 %v49_v4, %v48_v2  ;;  %v2117_v8 = vpack.c.bf16 %v51_v7, %v50_v6  ;;  %v38_v9 = vld [vmem:[%s2839_s0] sm:$0xff]  ;;  %v52_v10 = vld [vmem:[%s2838_s2 + $0x30] sm:$0xff]  ;;  %v53_v11 = vld [vmem:[%s2838_s2 + $0x38] sm:$0xff] }
   0x4   :  { %2110 = vmatprep.subr.bf16.mxu0 %v2109_v3  ;;  %1915 = vmatprep.mubr.f32.mxu0 %v38_v9  ;;  %v2121_v12 = vpack.c.bf16 %v53_v11, %v52_v10  ;;  %v54_v13 = vld [vmem:[%s2838_s2 + $0x40] sm:$0xff]  ;;  %v55_v14 = vld [vmem:[%s2838_s2 + $0x48] sm:$0xff]  ;;  %v56_v16 = vld [vmem:[%s2838_s2 + $0x50] sm:$0xff]  ;;  %v334_v6 = vsub.s32 1, %v2440_v62 }
   0x5   :  { %2112 = vmatpush3.bf16.msra.mxu0 %v2109_v3  ;;  %v2125_v15 = vpack.c.bf16 %v55_v14, %v54_v13  ;;  %v57_v17 = vld [vmem:[%s2838_s2 + $0x58] sm:$0xff]  ;;  %v58_v19 = vld [vmem:[%s2838_s2 + $0x60] sm:$0xff]  ;;  %v59_v20 = vld [vmem:[%s2838_s2 + $0x68] sm:$0xff] }
   0x6   :  { %2114 = vmatprep.subr.bf16.mxu0 %v2113_v5  ;;  %v2129_v18 = vpack.c.bf16 %v57_v17, %v56_v16  ;;  %v2133_v21 = vpack.c.bf16 %v59_v20, %v58_v19  ;;  %v60_v22 = vld [vmem:[%s2838_s2 + $0x70] sm:$0xff]  ;;  %v61_v23 = vld [vmem:[%s2838_s2 + $0x78] sm:$0xff]  ;;  %v39_v25 = vld [vmem:[%s2839_s0 + $0x8] sm:$0xff] }
   0x7   :  { %v2137_v24 = vpack.c.bf16 %v61_v23, %v60_v22  ;;  %v40_v26 = vld [vmem:[%s2839_s0 + $0x10] sm:$0xff]  ;;  %v41_v27 = vld [vmem:[%s2839_s0 + $0x18] sm:$0xff]  ;;  %v42_v28 = vld [vmem:[%s2839_s0 + $0x20] sm:$0xff] }
   0x8   :  { %v43_v29 = vld [vmem:[%s2839_s0 + $0x28] sm:$0xff]  ;;  %v44_v30 = vld [vmem:[%s2839_s0 + $0x30] sm:$0xff]  ;;  %v45_v31 = vld [vmem:[%s2839_s0 + $0x38] sm:$0xff] }
   0x9   :  { %2116 = vmatpush3.bf16.msra.mxu0 %v2113_v5  ;;  %v188_v32 = vld [vmem:[%s2840_s4] sm:$0xff]  ;;  %v189_v33 = vld [vmem:[%s2840_s4 + $0x8] sm:$0xff]  ;;  %v194_v38 = vld [vmem:[%s2840_s4 + $0x30] sm:$0xff] }
   0xa   :  { %2118 = vmatprep.subr.bf16.mxu0 %v2117_v8  ;;  %v2142_v34 = vpack.c.bf16 %v189_v33, %v188_v32  ;;  %v237_v36 = vld [vmem:[%s2841_s5 + $0x80] sm:$0xff]  ;;  %v238_v37 = vld [vmem:[%s2841_s5 + $0x88] sm:$0xff]  ;;  %v195_v40 = vld [vmem:[%s2840_s4 + $0x38] sm:$0xff] }
   0xb   :  { %v2144_v39 = vpack.c.bf16 %v238_v37, %v237_v36  ;;  %v2183_v41 = vpack.c.bf16 %v195_v40, %v194_v38  ;;  %v1725_v44 = vld [vmem:[%s2842_s3] ss:$0 sm:$0xff]  ;;  %v222_v10 = vld [vmem:[%s2841_s5 + $0x8] sm:$0xff]  ;;  %v239_v13 = vld [vmem:[%s2841_s5 + $0x90] sm:$0xff] }
   0xc   :  { %2143 = vmatpush3.bf16.msra.mxu1 %v2142_v34  ;;  %v221_v9 = vld [vmem:[%s2841_s5] sm:$0xff]  ;;  %v240_v14 = vld [vmem:[%s2841_s5 + $0x98] sm:$0xff]  ;;  %v198_v16 = vld [vmem:[%s2840_s4 + $0x50] sm:$0xff] }
   0xd   :  { %2120 = vmatpush3.bf16.msra.mxu0 %v2117_v8  ;;  %2145 = vmatprep.subr.bf16.mxu1 %v2144_v39  ;;  %v2452_v11 = vld [vmem:[%s2843_s1] sm:$0x3]  ;;  %v199_v17 = vld [vmem:[%s2840_s4 + $0x58] sm:$0xff]  ;;  %v2146_v19 = vpack.c.bf16 %v222_v10, %v221_v9  ;;  %v2148_v22 = vpack.c.bf16 %v240_v14, %v239_v13  ;;  %v223_v23 = vld [vmem:[%s2841_s5 + $0x10] sm:$0xff] }
   0xe   :  { %2122 = vmatprep.subr.bf16.mxu0 %v2121_v12  ;;  %v335_v20 = vrot.slane %v2452_v11, %v334_v6  ;;  %v225_v33 = vld [vmem:[%s2841_s5 + $0x20] sm:$0xff]  ;;  %v226_v34 = vld [vmem:[%s2841_s5 + $0x28] sm:$0xff]  ;;  %v243_v37 = vld [vmem:[%s2841_s5 + $0xb0] sm:$0xff] }
   0xf   :  { %v244_v38 = vld [vmem:[%s2841_s5 + $0xb8] sm:$0xff]  ;;  %v206_v40 = vld [vmem:[%s2840_s4 + $0x90] sm:$0xff]  ;;  %v249_v6 = vld [vmem:[%s2841_s5 + $0xe0] sm:$0xff] }
  0x10   :  { %v218_v9 = vld [vmem:[%s2840_s4 + $0xf0] sm:$0xff]  ;;  %v219_v10 = vld [vmem:[%s2840_s4 + $0xf8] sm:$0xff]  ;;  %v233_v14 = vld [vmem:[%s2841_s5 + $0x60] sm:$0xff] }
  0x11   :  { %2124 = vmatpush3.bf16.msra.mxu0 %v2121_v12 }
  0x12   :  { %2126 = vmatprep.subr.bf16.mxu0 %v2125_v15 }
  0x15   :  { %2128 = vmatpush3.bf16.msra.mxu0 %v2125_v15 }
  0x16   :  { %2130 = vmatprep.subr.bf16.mxu0 %v2129_v18 }
  0x19   :  { %2132 = vmatpush3.bf16.msra.mxu0 %v2129_v18 }
  0x1a   :  { %2134 = vmatprep.subr.bf16.mxu0 %v2133_v21 }
  0x1d   :  { %2136 = vmatpush3.bf16.msra.mxu0 %v2133_v21 }
  0x1e   :  { %2138 = vmatprep.subr.bf16.mxu0 %v2137_v24 }
  0x21   :  { %2140 = vmatpush3.bf16.msra.mxu0 %v2137_v24  ;;  %v224_v24 = vld [vmem:[%s2841_s5 + $0x18] sm:$0xff] }
  0x22   :  { %2182 = vmatprep.subr.bf16.mxu0 %v2276_v35 }
  0x24   :  { %1916 = vmatmul.mubr.f32.vlgmr.msra.gmra.mrb[0].mxu0 %v39_v25  ;;  %v2189_v25 = vpack.c.bf16 %v199_v17, %v198_v16  ;;  %v2219_v16 = vpack.c.bf16 %v219_v10, %v218_v9  ;;  %v251_v17 = vld [vmem:[%s2841_s5 + $0xf0] sm:$0xff]  ;;  %v1529_v9 = vld [vmem:[%s2844_s7 + $0x40] sm:$0xff]  ;;  %v1530_v10 = vld [vmem:[%s2844_s7 + $0x48] sm:$0xff] }
  0x25   :  { %1918 = vmatprep.mubr.f32.mxu0 %v40_v26  ;;  %2184 = vmatpush3.bf16.msra.mxu0 %v2183_v41  ;;  %v241_v26 = vld [vmem:[%s2841_s5 + $0xa0] sm:$0xff]  ;;  %v207_v41 = vld [vmem:[%s2840_s4 + $0x98] sm:$0xff] }
  0x26   :  { %2188 = vmatprep.subr.bf16.mxu0 %v2276_v35 }
  0x28   :  { %1919 = vmatmul.mubr.f32.gmra.mrb[2].mxu0 %v41_v27  ;;  %v242_v27 = vld [vmem:[%s2841_s5 + $0xa8] sm:$0xff] }
  0x29   :  { %1921 = vmatprep.mubr.f32.mxu0 %v42_v28  ;;  %v2152_v32 = vpack.c.bf16 %v242_v27, %v241_v26  ;;  %v330_v27 = vsub.s32 0, %v2440_v62 }
  0x2c   :  { %1922 = vmatmul.mubr.f32.gmra.mrb[4].mxu0 %v43_v29  ;;  %v202_v29 = vld [vmem:[%s2840_s4 + $0x70] sm:$0xff] }
  0x2d   :  { %1924 = vmatprep.mubr.f32.mxu0 %v44_v30  ;;  %v203_v30 = vld [vmem:[%s2840_s4 + $0x78] sm:$0xff] }
  0x2e   :  { %v2195_v36 = vpack.c.bf16 %v203_v30, %v202_v29  ;;  %v190_v29 = vld [vmem:[%s2840_s4 + $0x10] sm:$0xff]  ;;  %v191_v30 = vld [vmem:[%s2840_s4 + $0x18] sm:$0xff] }
  0x30   :  { %1925 = vmatmul.mubr.f32.gmra.mrb[6].mxu0 %v45_v31  ;;  %v2150_v31 = vpack.c.bf16 %v224_v24, %v223_v23  ;;  %v235_v24 = vld [vmem:[%s2841_s5 + $0x70] sm:$0xff] }
  0x31   :  { %1952 = vmatprep.mubr.msk.f32.mxu0 %vm2277_vm0, %v2278_v42 }
  0xf7   :  { %v1917_v43 = vpop.f32.mrb[0].mxu0 }
  0xf8   :  { %v135_v45 = vpop.f32.mrb[1].mxu0  ;;  %v141_v46 = vadd.f32 %v1917_v43, %v1725_v44  ;;  %v2154_v43 = vpack.c.bf16 %v226_v34, %v225_v33  ;;  %v192_v33 = vld [vmem:[%s2840_s4 + $0x20] sm:$0xff]  ;;  %v193_v34 = vld [vmem:[%s2840_s4 + $0x28] sm:$0xff] }
  0xf9   :  { %v136_v47 = vadd.f32 %v1725_v44, %v135_v45  ;;  %v227_v45 = vld [vmem:[%s2841_s5 + $0x30] sm:$0xff] }
  0xfa   :  { %v175_v52 = vmax.f32 %v141_v46, 0.0  ;;  %v228_v46 = vld [vmem:[%s2841_s5 + $0x38] sm:$0xff] }
  0xfb   :  { %v1920_v48 = vpop.f32.mrb[2].mxu0  ;;  %v174_v55 = vmax.f32 %v136_v47, 0.0  ;;  %v2201_v47 = vpack.c.bf16 %v207_v41, %v206_v40  ;;  %v200_v41 = vld [vmem:[%s2840_s4 + $0x60] sm:$0xff] }
  0xfc   :  { %v151_v49 = vadd.f32 %v1920_v48, %v1725_v44  ;;  %v145_v50 = vpop.f32.mrb[3].mxu0  ;;  %v245_v48 = vld [vmem:[%s2841_s5 + $0xc0] sm:$0xff] }
  0xfd   :  { %v146_v51 = vadd.f32 %v1725_v44, %v145_v50 }
  0xfe   :  { %v177_v53 = vmax.f32 %v151_v49, 0.0  ;;  %v246_v49 = vld [vmem:[%s2841_s5 + $0xc8] sm:$0xff] }
  0xff   :  { %v176_v56 = vmax.f32 %v146_v51, 0.0  ;;  %v1923_v57 = vpop.f32.mrb[4].mxu0  ;;  %v210_v51 = vld [vmem:[%s2840_s4 + $0xb0] sm:$0xff] }
 0x100   :  { %v183_v58 = vmax.f32 %v175_v52, %v177_v53  ;;  %v155_v59 = vpop.f32.mrb[5].mxu0  ;;  %v161_v61 = vadd.f32 %v1923_v57, %v1725_v44  ;;  %v211_v52 = vld [vmem:[%s2840_s4 + $0xb8] sm:$0xff]  ;;  %v2158_v53 = vpack.c.bf16 %v228_v46, %v227_v45  ;;  %v230_v57 = vld [vmem:[%s2841_s5 + $0x48] sm:$0xff]  ;;  %v204_v46 = vld [vmem:[%s2840_s4 + $0x80] sm:$0xff] }
 0x101   :  { %v182_v60 = vmax.f32 %v174_v55, %v176_v56  ;;  %v156_v63 = vadd.f32 %v1725_v44, %v155_v59  ;;  %v2160_v55 = vpack.c.bf16 %v246_v49, %v245_v48  ;;  %v229_v56 = vld [vmem:[%s2841_s5 + $0x40] sm:$0xff]  ;;  %v247_v59 = vld [vmem:[%s2841_s5 + $0xd0] sm:$0xff] }
 0x102   :  { %v179_v4 = vmax.f32 %v161_v61, 0.0 }
 0x103   :  { %v1926_v0 = vpop.f32.mrb[6].mxu0  ;;  %v178_v7 = vmax.f32 %v156_v63, 0.0  ;;  %v214_v63 = vld [vmem:[%s2840_s4 + $0xd0] sm:$0xff] }
 0x104   :  { %v171_v1 = vadd.f32 %v1926_v0, %v1725_v44  ;;  %v165_v2 = vpop.f32.mrb[7].mxu0  ;;  %v215_v0 = vld [vmem:[%s2840_s4 + $0xd8] sm:$0xff] }
 0x105   :  { %v166_v3 = vadd.f32 %v1725_v44, %v165_v2  ;;  %v2156_v44 = vpack.c.bf16 %v244_v38, %v243_v37  ;;  %v196_v37 = vld [vmem:[%s2840_s4 + $0x40] sm:$0xff]  ;;  %v197_v38 = vld [vmem:[%s2840_s4 + $0x48] sm:$0xff] }
 0x106   :  { %v181_v5 = vmax.f32 %v171_v1, 0.0  ;;  %v2162_v1 = vpack.c.bf16 %v230_v57, %v229_v56  ;;  %v216_v57 = vld [vmem:[%s2840_s4 + $0xe0] sm:$0xff] }
 0x107   :  { %v180_v8 = vmax.f32 %v166_v3, 0.0  ;;  %v231_v3 = vld [vmem:[%s2841_s5 + $0x50] sm:$0xff] }
 0x108   :  { %v185_v12 = vmax.f32 %v179_v4, %v181_v5  ;;  %v232_v4 = vld [vmem:[%s2841_s5 + $0x58] sm:$0xff]  ;;  %v2213_v5 = vpack.c.bf16 %v215_v0, %v214_v63  ;;  %v1521_v63 = vld [vmem:[%s2844_s7] sm:$0xff]  ;;  %v1522_v0 = vld [vmem:[%s2844_s7 + $0x8] sm:$0xff] }
 0x109   :  { %v184_v15 = vmax.f32 %v178_v7, %v180_v8  ;;  %v250_v7 = vld [vmem:[%s2841_s5 + $0xe8] sm:$0xff] }
 0x10a   :  { %v2466_v18 = vmax.f32 %v183_v58, %v185_v12  ;;  %v2207_v58 = vpack.c.bf16 %v211_v52, %v210_v51  ;;  %v2166_v12 = vpack.c.bf16 %v232_v4, %v231_v3  ;;  %v2168_v13 = vpack.c.bf16 %v250_v7, %v249_v6  ;;  %v209_v51 = vld [vmem:[%s2840_s4 + $0xa8] sm:$0xff]  ;;  %v1525_v3 = vld [vmem:[%s2844_s7 + $0x20] sm:$0xff]  ;;  %v1527_v6 = vld [vmem:[%s2844_s7 + $0x30] sm:$0xff] }
 0x10b   :  { %v2469_v21 = vmax.f32 %v182_v60, %v184_v15  ;;  %v248_v60 = vld [vmem:[%s2841_s5 + $0xd8] sm:$0xff]  ;;  %v234_v15 = vld [vmem:[%s2841_s5 + $0x68] sm:$0xff] }
 0x10c   :  { %v1000_v61 = vrot.slane %v2466_v18, 1  ;;  %v2164_v2 = vpack.c.bf16 %v248_v60, %v247_v59  ;;  %v1148_v8 = vrot.slane %v2466_v18, 3  ;;  %v1444_v26 = vrot.slane %v2466_v18, 7  ;;  %v1526_v4 = vld [vmem:[%s2844_s7 + $0x28] sm:$0xff]  ;;  %v1528_v7 = vld [vmem:[%s2844_s7 + $0x38] sm:$0xff] }
 0x10d   :  { %1932 = vmatmul.mubr.msk.f32.vlgmr.msra.gmra.mrb[0].mxu1 %vm253_vm1, %v2469_v21  ;;  %v556_v28 = vrot.slane %v2469_v21, 3  ;;  %v704_v39 = vrot.slane %v2469_v21, 5  ;;  %v852_v50 = vrot.slane %v2469_v21, 7  ;;  %v482_v40 = vrot.slane %v2469_v21, 2 }
 0x10e   :  { %2147 = vmatpush3.bf16.msra.mxu1 %v2146_v19  ;;  %402 = vmatprep.mubr.f32.mxu1 %v335_v20  ;;  %v252_v19 = vld [vmem:[%s2841_s5 + $0xf8] sm:$0xff]  ;;  %v1296_v20 = vrot.slane %v2466_v18, 5  ;;  %v630_v45 = vrot.slane %v2469_v21, 4  ;;  %v778_v49 = vrot.slane %v2469_v21, 6  ;;  %v1074_v56 = vrot.slane %v2466_v18, 2 }
 0x10f   :  { %1953 = vmatmul.mubr.msk.f32.vlgmr.msra.gmra.mrb[8].mxu0 %vm253_vm1, %v556_v28  ;;  %2149 = vmatprep.subr.bf16.mxu1 %v2148_v22  ;;  %v2170_v22 = vpack.c.bf16 %v234_v15, %v233_v14  ;;  %v2172_v23 = vpack.c.bf16 %v252_v19, %v251_v17  ;;  %v1222_v60 = vrot.slane %v2466_v18, 4  ;;  %v1532_v14 = vld [vmem:[%s2844_s7 + $0x58] sm:$0xff]  ;;  %v1534_v17 = vld [vmem:[%s2844_s7 + $0x68] sm:$0xff] }
 0x110   :  { %2190 = vmatpush3.bf16.msra.mxu0 %v2189_v25  ;;  %1966 = vmatprep.mubr.msk.f32.mxu0 %vm2277_vm0, %v2278_v42  ;;  %v236_v25 = vld [vmem:[%s2841_s5 + $0x78] sm:$0xff] }
 0x111   :  { %2194 = vmatprep.subr.bf16.mxu0 %v2276_v35  ;;  %v2174_v28 = vpack.c.bf16 %v236_v25, %v235_v24  ;;  %v1609_v24 = vld [vmem:[%s2845_s9] sm:$0xff]  ;;  %v1610_v25 = vld [vmem:[%s2845_s9 + $0x8] sm:$0xff] }
 0x112   :  { %2151 = vmatpush3.bf16.msra.mxu1 %v2150_v31  ;;  %v331_v31 = vrot.slane %v2452_v11, %v330_v27  ;;  %v408_v11 = vrot.slane %v2469_v21, 1  ;;  %v212_v21 = vld [vmem:[%s2840_s4 + $0xc0] sm:$0xff] }
 0x113   :  { %1967 = vmatmul.mubr.msk.f32.vlgmr.msra.gmra.mrb[10].mxu0 %vm253_vm1, %v704_v39  ;;  %2153 = vmatprep.subr.bf16.mxu1 %v2152_v32  ;;  %v2177_v32 = vpack.c.bf16 %v191_v30, %v190_v29  ;;  %v2186_v39 = vpack.c.bf16 %v197_v38, %v196_v37  ;;  %v1612_v29 = vld [vmem:[%s2845_s9 + $0x18] sm:$0xff]  ;;  %v1617_v37 = vld [vmem:[%s2845_s9 + $0x40] sm:$0xff]  ;;  %v1618_v38 = vld [vmem:[%s2845_s9 + $0x48] sm:$0xff] }
 0x114   :  { %2196 = vmatpush3.bf16.msra.mxu0 %v2195_v36  ;;  %1980 = vmatprep.mubr.msk.f32.mxu0 %vm2277_vm0, %v2278_v42  ;;  %v2180_v36 = vpack.c.bf16 %v193_v34, %v192_v33  ;;  %v1615_v34 = vld [vmem:[%s2845_s9 + $0x30] sm:$0xff] }
 0x115   :  { %2200 = vmatprep.subr.bf16.mxu0 %v2276_v35 }
 0x116   :  { %2155 = vmatpush3.bf16.msra.mxu1 %v2154_v43  ;;  %v201_v43 = vld [vmem:[%s2840_s4 + $0x68] sm:$0xff] }
 0x117   :  { %1981 = vmatmul.mubr.msk.f32.vlgmr.msra.gmra.mrb[12].mxu0 %vm253_vm1, %v852_v50  ;;  %2157 = vmatprep.subr.bf16.mxu1 %v2156_v44  ;;  %v2192_v44 = vpack.c.bf16 %v201_v43, %v200_v41  ;;  %v208_v50 = vld [vmem:[%s2840_s4 + $0xa0] sm:$0xff]  ;;  %v1620_v41 = vld [vmem:[%s2845_s9 + $0x58] sm:$0xff] }
 0x118   :  { %2202 = vmatpush3.bf16.msra.mxu0 %v2201_v47  ;;  %1994 = vmatprep.mubr.msk.f32.mxu0 %vm2277_vm0, %v2278_v42  ;;  %v205_v47 = vld [vmem:[%s2840_s4 + $0x88] sm:$0xff]  ;;  %v2204_v52 = vpack.c.bf16 %v209_v51, %v208_v50 }
 0x119   :  { %2206 = vmatprep.subr.bf16.mxu0 %v2276_v35  ;;  %v2198_v48 = vpack.c.bf16 %v205_v47, %v204_v46 }
 0x11a   :  { %2159 = vmatpush3.bf16.msra.mxu1 %v2158_v53  ;;  %v213_v53 = vld [vmem:[%s2840_s4 + $0xc8] sm:$0xff] }
 0x11b   :  { %1995 = vmatmul.mubr.msk.f32.vlgmr.msra.gmra.mrb[14].mxu0 %vm253_vm1, %v1000_v61  ;;  %2161 = vmatprep.subr.bf16.mxu1 %v2160_v55  ;;  %v2210_v55 = vpack.c.bf16 %v213_v53, %v212_v21  ;;  %v1370_v61 = vrot.slane %v2466_v18, 6 }
 0x11c   :  { %2208 = vmatpush3.bf16.msra.mxu0 %v2207_v58  ;;  %2008 = vmatprep.mubr.msk.f32.mxu0 %vm2277_vm0, %v2278_v42  ;;  %v217_v58 = vld [vmem:[%s2840_s4 + $0xe8] sm:$0xff] }
 0x11d   :  { %2212 = vmatprep.subr.bf16.mxu0 %v2276_v35  ;;  %v2216_v59 = vpack.c.bf16 %v217_v58, %v216_v57 }
 0x11e   :  { %2163 = vmatpush3.bf16.msra.mxu1 %v2162_v1  ;;  %v2222_v1 = vpack.c.bf16 %v1522_v0, %v1521_v63 }
 0x11f   :  { %2009 = vmatmul.mubr.msk.f32.vlgmr.msra.gmra.mrb[16].mxu0 %vm253_vm1, %v1148_v8  ;;  %2165 = vmatprep.subr.bf16.mxu1 %v2164_v2  ;;  %v2231_v8 = vpack.c.bf16 %v1528_v7, %v1527_v6 }
 0x120   :  { %2214 = vmatpush3.bf16.msra.mxu0 %v2213_v5  ;;  %2022 = vmatprep.mubr.msk.f32.mxu0 %vm2277_vm0, %v2278_v42  ;;  %v2228_v5 = vpack.c.bf16 %v1526_v4, %v1525_v3 }
 0x121   :  { %2218 = vmatprep.subr.bf16.mxu0 %v2276_v35 }
 0x122   :  { %2167 = vmatpush3.bf16.msra.mxu1 %v2166_v12  ;;  %v2234_v12 = vpack.c.bf16 %v1530_v10, %v1529_v9 }
 0x123   :  { %2023 = vmatmul.mubr.msk.f32.vlgmr.msra.gmra.mrb[18].mxu0 %vm253_vm1, %v1296_v20  ;;  %2169 = vmatprep.subr.bf16.mxu1 %v2168_v13  ;;  %v1531_v13 = vld [vmem:[%s2844_s7 + $0x50] sm:$0xff] }
 0x124   :  { %2220 = vmatpush3.bf16.msra.mxu0 %v2219_v16  ;;  %2036 = vmatprep.mubr.msk.f32.mxu0 %vm2277_vm0, %v2278_v42  ;;  %v2237_v15 = vpack.c.bf16 %v1532_v14, %v1531_v13  ;;  %v1533_v16 = vld [vmem:[%s2844_s7 + $0x60] sm:$0xff]  ;;  %v1535_v20 = vld [vmem:[%s2844_s7 + $0x70] sm:$0xff] }
 0x125   :  { %2245 = vmatprep.subr.bf16.mxu0 %v2276_v35  ;;  %v2240_v19 = vpack.c.bf16 %v1534_v17, %v1533_v16 }
 0x126   :  { %2171 = vmatpush3.bf16.msra.mxu1 %v2170_v22  ;;  %v1536_v22 = vld [vmem:[%s2844_s7 + $0x78] sm:$0xff] }
 0x127   :  { %2037 = vmatmul.mubr.msk.f32.vlgmr.msra.gmra.mrb[20].mxu0 %vm253_vm1, %v1444_v26  ;;  %2173 = vmatprep.subr.bf16.mxu1 %v2172_v23  ;;  %v2243_v23 = vpack.c.bf16 %v1536_v22, %v1535_v20  ;;  %v1611_v26 = vld [vmem:[%s2845_s9 + $0x10] sm:$0xff] }
 0x128   :  { %2106 = vmatprep.mubr.msk.f32.mxu0 %vm2277_vm0, %v2278_v42  ;;  %v2249_v30 = vpack.c.bf16 %v1612_v29, %v1611_v26 }
 0x12a   :  { %2175 = vmatpush3.bf16.msra.mxu1 %v2174_v28  ;;  %v2246_v28 = vpack.c.bf16 %v1610_v25, %v1609_v24 }
 0x12b   :  { %2176 = vmatprep.subr.bf16.mxu1 %v2276_v35 }
 0x12c   :  { %2247 = vmatpush3.bf16.msra.mxu0 %v2246_v28 }
 0x12d   :  { %403 = vmatmul.mubr.f32.vlgmr.msra.gmra.mrb[2].mxu1 %v331_v31  ;;  %2248 = vmatprep.subr.bf16.mxu0 %v2276_v35  ;;  %v1613_v31 = vld [vmem:[%s2845_s9 + $0x20] sm:$0xff] }
 0x12e   :  { %2178 = vmatpush3.bf16.msra.mxu1 %v2177_v32  ;;  %1938 = vmatprep.mubr.msk.f32.mxu1 %vm2277_vm0, %v2278_v42  ;;  %v1614_v32 = vld [vmem:[%s2845_s9 + $0x28] sm:$0xff] }
 0x12f   :  { %2179 = vmatprep.subr.bf16.mxu1 %v2276_v35  ;;  %v2252_v33 = vpack.c.bf16 %v1614_v32, %v1613_v31 }
 0x130   :  { %2250 = vmatpush3.bf16.msra.mxu0 %v2249_v30 }
 0x131   :  { %1939 = vmatmul.mubr.msk.f32.vlgmr.msra.gmra.mrb[4].mxu1 %vm253_vm1, %v408_v11  ;;  %2251 = vmatprep.subr.bf16.mxu0 %v2276_v35 }
 0x132   :  { %2181 = vmatpush3.bf16.msra.mxu1 %v2180_v36  ;;  %1945 = vmatprep.mubr.msk.f32.mxu1 %vm2277_vm0, %v2278_v42  ;;  %v1616_v36 = vld [vmem:[%s2845_s9 + $0x38] sm:$0xff] }
 0x133   :  { %2185 = vmatprep.subr.bf16.mxu1 %v2276_v35  ;;  %v2255_v11 = vpack.c.bf16 %v1616_v36, %v1615_v34  ;;  %v1518_v36 = vld [vmem:[%s2846_s6] sm:$0x1] }
 0x134   :  { %2253 = vmatpush3.bf16.msra.mxu0 %v2252_v33 }
 0x135   :  { %1946 = vmatmul.mubr.msk.f32.vlgmr.msra.gmra.mrb[6].mxu1 %vm253_vm1, %v482_v40  ;;  %2254 = vmatprep.subr.bf16.mxu0 %v2276_v35  ;;  %v1619_v40 = vld [vmem:[%s2845_s9 + $0x50] sm:$0xff] }
 0x136   :  { %2187 = vmatpush3.bf16.msra.mxu1 %v2186_v39  ;;  %1959 = vmatprep.mubr.msk.f32.mxu1 %vm2277_vm0, %v2278_v42  ;;  %v2258_v39 = vpack.c.bf16 %v1618_v38, %v1617_v37  ;;  %v2261_v43 = vpack.c.bf16 %v1620_v41, %v1619_v40  ;;  %v1624_v40 = vld [vmem:[%s2845_s9 + $0x78] sm:$0xff] }
 0x137   :  { %2191 = vmatprep.subr.bf16.mxu1 %v2276_v35 }
 0x138   :  { %2256 = vmatpush3.bf16.msra.mxu0 %v2255_v11 }
 0x139   :  { %1960 = vmatmul.mubr.msk.f32.vlgmr.msra.gmra.mrb[8].mxu1 %vm253_vm1, %v630_v45  ;;  %2257 = vmatprep.subr.bf16.mxu0 %v2276_v35  ;;  %v1622_v45 = vld [vmem:[%s2845_s9 + $0x68] sm:$0xff] }
 0x13a   :  { %2193 = vmatpush3.bf16.msra.mxu1 %v2192_v44  ;;  %1973 = vmatprep.mubr.msk.f32.mxu1 %vm2277_vm0, %v2278_v42  ;;  %v1621_v44 = vld [vmem:[%s2845_s9 + $0x60] sm:$0xff] }
 0x13b   :  { %2197 = vmatprep.subr.bf16.mxu1 %v2276_v35  ;;  %v2264_v46 = vpack.c.bf16 %v1622_v45, %v1621_v44 }
 0x13c   :  { %2259 = vmatpush3.bf16.msra.mxu0 %v2258_v39  ;;  %v1623_v39 = vld [vmem:[%s2845_s9 + $0x70] sm:$0xff] }
 0x13d   :  { %1974 = vmatmul.mubr.msk.f32.vlgmr.msra.gmra.mrb[10].mxu1 %vm253_vm1, %v778_v49  ;;  %2260 = vmatprep.subr.bf16.mxu0 %v2276_v35  ;;  %v2267_v41 = vpack.c.bf16 %v1624_v40, %v1623_v39 }
 0x13e   :  { %2199 = vmatpush3.bf16.msra.mxu1 %v2198_v48  ;;  %1987 = vmatprep.mubr.msk.f32.mxu1 %vm2277_vm0, %v2278_v42 }
 0x13f   :  { %2203 = vmatprep.subr.bf16.mxu1 %v2276_v35 }
 0x140   :  { %2262 = vmatpush3.bf16.msra.mxu0 %v2261_v43  ;;  %v1537_v43 = vld [vmem:[%s2847_s8] sm:$0x1] }
 0x141   :  { %1988 = vmatmul.mubr.msk.f32.vlgmr.msra.gmra.mrb[12].mxu1 %vm253_vm1, %v2466_v18  ;;  %v1523_v18 = vld [vmem:[%s2844_s7 + $0x10] sm:$0xff]  ;;  %2263 = vmatprep.subr.bf16.mxu0 %v2276_v35 }
 0x142   :  { %2205 = vmatpush3.bf16.msra.mxu1 %v2204_v52  ;;  %2001 = vmatprep.mubr.msk.f32.mxu1 %vm2277_vm0, %v2278_v42 }
 0x143   :  { %2209 = vmatprep.subr.bf16.mxu1 %v2276_v35 }
 0x144   :  { %2265 = vmatpush3.bf16.msra.mxu0 %v2264_v46 }
 0x145   :  { %2002 = vmatmul.mubr.msk.f32.vlgmr.msra.gmra.mrb[14].mxu1 %vm253_vm1, %v1074_v56  ;;  %2266 = vmatprep.subr.bf16.mxu0 %v2276_v35 }
 0x146   :  { %2211 = vmatpush3.bf16.msra.mxu1 %v2210_v55  ;;  %2015 = vmatprep.mubr.msk.f32.mxu1 %vm2277_vm0, %v2278_v42 }
 0x147   :  { %2215 = vmatprep.subr.bf16.mxu1 %v2276_v35 }
 0x148   :  { %2268 = vmatpush3.bf16.msra.mxu0 %v2267_v41 }
 0x149   :  { %2016 = vmatmul.mubr.msk.f32.vlgmr.msra.gmra.mrb[16].mxu1 %vm253_vm1, %v1222_v60 }
 0x14a   :  { %2217 = vmatpush3.bf16.msra.mxu1 %v2216_v59  ;;  %2029 = vmatprep.mubr.msk.f32.mxu1 %vm2277_vm0, %v2278_v42 }
 0x14b   :  { %2221 = vmatprep.subr.bf16.mxu1 %v2276_v35 }
 0x14d   :  { %2030 = vmatmul.mubr.msk.f32.vlgmr.msra.gmra.mrb[18].mxu1 %vm253_vm1, %v1370_v61 }
 0x14e   :  { %2071 = vmatprep.mubr.msk.f32.mxu1 %vm2277_vm0, %v2278_v42  ;;  %2223 = vmatpush3.bf16.msra.mxu1 %v2222_v1  ;;  %v1524_v42 = vld [vmem:[%s2844_s7 + $0x18] sm:$0xff] }
 0x14f   :  { %2224 = vmatprep.subr.bf16.mxu1 %v2276_v35  ;;  %v2225_v2 = vpack.c.bf16 %v1524_v42, %v1523_v18 }
 0x152   :  { %2226 = vmatpush3.bf16.msra.mxu1 %v2225_v2 }
 0x153   :  { %2227 = vmatprep.subr.bf16.mxu1 %v2276_v35 }
 0x156   :  { %2229 = vmatpush3.bf16.msra.mxu1 %v2228_v5 }
 0x157   :  { %2230 = vmatprep.subr.bf16.mxu1 %v2276_v35 }
 0x15a   :  { %2232 = vmatpush3.bf16.msra.mxu1 %v2231_v8 }
 0x15b   :  { %2233 = vmatprep.subr.bf16.mxu1 %v2276_v35 }
 0x15e   :  { %2235 = vmatpush3.bf16.msra.mxu1 %v2234_v12 }
 0x15f   :  { %2236 = vmatprep.subr.bf16.mxu1 %v2276_v35 }
 0x162   :  { %2238 = vmatpush3.bf16.msra.mxu1 %v2237_v15 }
 0x163   :  { %2239 = vmatprep.subr.bf16.mxu1 %v2276_v35 }
 0x166   :  { %2241 = vmatpush3.bf16.msra.mxu1 %v2240_v19 }
 0x167   :  { %2242 = vmatprep.subr.bf16.mxu1 %v2276_v35 }
 0x16a   :  { %2244 = vmatpush3.bf16.msra.mxu1 %v2243_v23 }
 0x1e0   :  { %v323_v47 = vpop.f32.mrb[0].mxu1 }
 0x1e1   :  { %v1933_v48 = vpop.f32.mrb[1].mxu1 }
 0x1e2   :  { %v625_v49 = vpop.f32.mrb[8].mxu0  ;;  %v1697_v48 = vand.u32 127, %v328_v54 }
 0x1e3   :  { %v1954_v50 = vpop.f32.mrb[9].mxu0 }
 0x1e4   :  { %vm1698_vm2 = vcmp.lt.s32.totalorder %v1697_v48, 4 }
 0x1e6   :  { %v773_v51 = vpop.f32.mrb[10].mxu0 }
 0x1e7   :  { %v1968_v52 = vpop.f32.mrb[11].mxu0 }
 0x1ea   :  { %v921_v21 = vpop.f32.mrb[12].mxu0 }
 0x1eb   :  { %v1982_v53 = vpop.f32.mrb[13].mxu0 }
 0x1ee   :  { %v1069_v55 = vpop.f32.mrb[14].mxu0 }
 0x1ef   :  { %v1996_v56 = vpop.f32.mrb[15].mxu0 }
 0x1f2   :  { %v1217_v57 = vpop.f32.mrb[16].mxu0 }
 0x1f3   :  { %v2010_v58 = vpop.f32.mrb[17].mxu0 }
 0x1f6   :  { %v1365_v59 = vpop.f32.mrb[18].mxu0 }
 0x1f7   :  { %v2024_v60 = vpop.f32.mrb[19].mxu0 }
 0x1fa   :  { %v1513_v61 = vpop.f32.mrb[20].mxu0 }
 0x1fb   :  { %v2038_v63 = vpop.f32.mrb[21].mxu0 }
 0x200   :  { %v1801_v0 = vpop.f32.mrb[2].mxu1 }
 0x201   :  { %v1802_v1 = vpop.f32.mrb[3].mxu1 }
 0x202   :  { %v1803_v18 = vadd.f32 %v1802_v1, %v1801_v0 }
 0x204   :  { %v405_v35 = vadd.f32 %v1803_v18, %v323_v47  ;;  %v477_v42 = vpop.f32.mrb[4].mxu1 }
 0x205   :  { %v1940_v2 = vpop.f32.mrb[5].mxu1 }
 0x206   :  { %v481_v3 = vadd.f32 %v477_v42, %v405_v35 }
 0x208   :  { %v551_v4 = vpop.f32.mrb[6].mxu1 }
 0x209   :  { %v555_v5 = vadd.f32 %v551_v4, %v481_v3  ;;  %v1947_v6 = vpop.f32.mrb[7].mxu1 }
 0x20b   :  { %v629_v7 = vadd.f32 %v625_v49, %v555_v5  ;;  %v1625_v49 = vld [vmem:[%s2848_s10] sm:$0x1] }
 0x20c   :  { %v699_v8 = vpop.f32.mrb[8].mxu1 }
 0x20d   :  { %v703_v9 = vadd.f32 %v699_v8, %v629_v7  ;;  %v1961_v10 = vpop.f32.mrb[9].mxu1 }
 0x20f   :  { %v777_v12 = vadd.f32 %v773_v51, %v703_v9 }
 0x210   :  { %v847_v13 = vpop.f32.mrb[10].mxu1 }
 0x211   :  { %v851_v14 = vadd.f32 %v847_v13, %v777_v12  ;;  %v1975_v15 = vpop.f32.mrb[11].mxu1 }
 0x213   :  { %v925_v16 = vadd.f32 %v921_v21, %v851_v14 }
 0x214   :  { %v995_v17 = vpop.f32.mrb[12].mxu1 }
 0x215   :  { %v999_v19 = vadd.f32 %v995_v17, %v925_v16  ;;  %v1989_v20 = vpop.f32.mrb[13].mxu1 }
 0x217   :  { %v1073_v22 = vadd.f32 %v1069_v55, %v999_v19 }
 0x218   :  { %v1143_v23 = vpop.f32.mrb[14].mxu1 }
 0x219   :  { %v1147_v24 = vadd.f32 %v1143_v23, %v1073_v22  ;;  %v2003_v25 = vpop.f32.mrb[15].mxu1 }
 0x21b   :  { %v1221_v26 = vadd.f32 %v1217_v57, %v1147_v24 }
 0x21c   :  { %v1291_v28 = vpop.f32.mrb[16].mxu1 }
 0x21d   :  { %v1295_v29 = vadd.f32 %v1291_v28, %v1221_v26  ;;  %v2017_v30 = vpop.f32.mrb[17].mxu1 }
 0x21f   :  { %v1369_v31 = vadd.f32 %v1365_v59, %v1295_v29 }
 0x220   :  { %v1439_v32 = vpop.f32.mrb[18].mxu1 }
 0x221   :  { %v1443_v33 = vadd.f32 %v1439_v32, %v1369_v31  ;;  %v2031_v34 = vpop.f32.mrb[19].mxu1 }
 0x223   :  { %v1517_v11 = vadd.f32 %v1513_v61, %v1443_v33 }
 0x225   :  { %v1519_v37 = vadd.f32 %v1518_v36, %v1517_v11 }
 0x227   :  { %v1520_v38 = vmax.f32 %v1519_v37, 0.0 }
 0x229   :  { %2072 = vmatmul.mubr.f32.vlgmr.msra.gmra.mrb[20].mxu1 %v1520_v38 }
 0x2fc   :  { %v1604_v44 = vpop.f32.mrb[20].mxu1 }
 0x2fd   :  { %v1605_v45 = vadd.f32 %v1604_v44, %v1537_v43  ;;  %v2073_v46 = vpop.f32.mrb[21].mxu1 }
 0x2ff   :  { %v1608_v47 = vmax.f32 %v1605_v45, 0.0 }
 0x301   :  { %2107 = vmatmul.mubr.f32.vlgmr.msra.gmra.mrb[22].mxu0 %v1608_v47 }
 0x3d4   :  { %v1692_v50 = vpop.f32.mrb[22].mxu0 }
 0x3d5   :  { %v1693_v51 = vadd.f32 %v1692_v50, %v1625_v49  ;;  %v2108_v52 = vpop.f32.mrb[23].mxu0 }
 0x3d7   :  { %v1699_v21 = vsel %vm1698_vm2, %v1693_v51, -1e+30 }
 0x3d8   :  { %v1701_v53 = vsel %vm1700_vm3, %v1699_v21, -inf }
 0x3d9   :  { %1702 = vmax.xlane.f32.xlu0 %v1701_v53 }
 0x466   :  { %v1703_v55 = vpop.xlane.xlu0 %1702 }
 0x467   :  { %v1704_v56 = vsub.f32 %v1699_v21, %v1703_v55 }
 0x469   :  { %v1705_v57 = vmul.f32 1.442695, %v1704_v56 }
 0x46b   :  { %2272 = vpow2.f32 %v1705_v57 }
 0x475   :  { %v2273_v58 = vpop.eup %2272 }
 0x476   :  { %v1707_v54 = vsel %vm1698_vm2, %v2273_v58, 0.0 }
 0x477   :  { %v1708_v59 = vsel %vm1700_vm3, %v1707_v54, 0.0 }
 0x478   :  { %1709 = vadd.xlane.f32.xlu0 %v1708_v59 }
 0x505   :  { %v1710_v60 = vpop.xlane.xlu0 %1709 }
 0x506   :  { %2274 = vlog2.f32 %v1710_v60 }
 0x510   :  { %v2275_v61 = vpop.eup %2274 }
 0x511   :  { %v1712_v63 = vmul.f32 0.6931472, %v2275_v61 }
 0x513   :  { %v1713_v0 = vadd.f32 %v1712_v63, %v1703_v55 }
 0x515   :  { %v1714_v1 = vsub.f32 %v1693_v51, %v1713_v0 }
 0x517   :  { %v1715_v18 = vsel %vm1698_vm2, %v1714_v1, %v1693_v51 }
 0x518   :  { %v1719_v35 = vrot.slane %v1715_v18, %v330_v27 }
 0x51a   :  { %1720 = vst [vmem:[%s2849_s11] sm:$0xff] %v1719_v35 }

</bundles_post_ra>
